<compile_context>
chip_gen: v7x
topology: tpu7x:2x2x1
jax: 0.10.0
libtpu: 0.0.40
codegen_flags: <defaults>
</compile_context>

<pallas_src>
import functools

import jax
import jax.numpy as jnp
from jax.experimental import pallas as pl
from jax.experimental.pallas import tpu as pltpu


# ----------------------------------------------------------------------------
# Pallas kernel: fused net_forward (backbone 1x1 conv + ReLU -> global avg pool
# over spatial -> pose_fc head), tiled over (batch, spatial) with an on-chip
# f32 accumulator.
# ----------------------------------------------------------------------------
def _net_forward_kernel(x_img_ref, x_rnd_ref, w1t_img_ref, w1t_rnd_ref,
                        b1_ref, wpt_ref, bp_ref, pose_ref, acc_ref, *, inv_s):
    s = pl.program_id(1)

    @pl.when(s == 0)
    def _():
        acc_ref[...] = jnp.zeros_like(acc_ref)

    # 1x1 conv == channel matmul, lane-dense: (F, C) @ (C, S_tile) -> (F, S_tile)
    h = jnp.dot(w1t_img_ref[...], x_img_ref[...],
                preferred_element_type=jnp.float32)
    h = h + jnp.dot(w1t_rnd_ref[...], x_rnd_ref[...],
                    preferred_element_type=jnp.float32)
    h = jnp.maximum(h + b1_ref[...], 0.0)                   # bias + ReLU (VPU)
    # Partial spatial sum: cross-lane reduce (XLU slot -> free filler while the
    # next tile's DMA is in flight), accumulated in f32.
    acc_ref[...] += jnp.sum(h, axis=-1, keepdims=True)       # (F, 1)

    @pl.when(s == pl.num_programs(1) - 1)
    def _():
        feat = acc_ref[...] * inv_s                           # global average pool
        pose_ref[...] = (
            jnp.dot(wpt_ref[...], feat, preferred_element_type=jnp.float32)
            + bp_ref[...])                                    # (9, 1)


def _pick_s_tile(S, max_tile=16384):
    """Largest lane-dense tile (multiple of 128) dividing S, capped at max_tile.

    Falls back to a single full-S tile when S is not 128-aligned (full-extent
    block is always legal).
    """
    if S % 128 != 0 or S <= max_tile:
        return S
    best = 128
    t = 128
    while t <= max_tile:
        if S % t == 0:
            best = t
        t += 128
    return best


def net_forward(images_crop, renders, w1, b1, wp, bp, *, s_tile=None):
    """Pallas-accelerated PosePredictor.net_forward (pose head only).

    images_crop: (B, 3, H, W)   cropped input RGB
    renders:     (B, 6, H, W)   rendered RGB + normals (n_rendered_views=1)
    w1: (9, F)  backbone 1x1-conv weight (in, out);  b1: (F,)
    wp: (F, 9)  pose_fc weight (in, out);            bp: (9,)
    NOTE: a real PyTorch nn.Linear stores weight as (out, in); such checkpoints
    must be transposed to the (in, out) layout expected here.
    """
    B, C_img, H, W = images_crop.shape
    C_rnd = renders.shape[1]
    S = H * W
    F = w1.shape[1]

    if s_tile is None:
        s_tile = _pick_s_tile(S)
    assert S % s_tile == 0 and (s_tile % 128 == 0 or s_tile == S)
    n_s = S // s_tile

    # Free reshapes (no transpose, no concat): NCHW -> (B, C, S).
    x_img = images_crop.reshape(B, C_img, S)
    x_rnd = renders.reshape(B, C_rnd, S)

    # Tiny parameter re-layouts (a few KB total, negligible).
    w1t_img = jnp.transpose(w1[:C_img])            # (F, C_img)
    w1t_rnd = jnp.transpose(w1[C_img:])            # (F, C_rnd)
    b1_col = b1.reshape(F, 1)
    wpt = jnp.transpose(wp)                        # (9, F)
    bp_col = bp.reshape(9, 1)

    kernel = functools.partial(_net_forward_kernel, inv_s=1.0 / S)

    pose = pl.pallas_call(
        kernel,
        out_shape=jax.ShapeDtypeStruct((B, 9, 1), jnp.float32),
        grid_spec=pltpu.PrefetchScalarGridSpec(
            num_scalar_prefetch=0,
            grid=(B, n_s),
            in_specs=[
                pl.BlockSpec((None, C_img, s_tile), lambda b, s: (b, 0, s)),
                pl.BlockSpec((None, C_rnd, s_tile), lambda b, s: (b, 0, s)),
                pl.BlockSpec((F, C_img), lambda b, s: (0, 0)),
                pl.BlockSpec((F, C_rnd), lambda b, s: (0, 0)),
                pl.BlockSpec((F, 1), lambda b, s: (0, 0)),
                pl.BlockSpec((9, F), lambda b, s: (0, 0)),
                pl.BlockSpec((9, 1), lambda b, s: (0, 0)),
            ],
            out_specs=pl.BlockSpec((None, 9, 1), lambda b, s: (b, 0, 0)),
            scratch_shapes=[pltpu.VMEM((F, 1), jnp.float32)],
        ),
        compiler_params=pltpu.CompilerParams(
            dimension_semantics=("parallel", "arbitrary"),
            vmem_limit_bytes=32 * 1024 * 1024),
    )(x_img, x_rnd, w1t_img, w1t_rnd, b1_col, wpt, bp_col)
    return pose.reshape(B, 9)


# ----------------------------------------------------------------------------
# Tiny pose-update algebra (batch of 3x3 / 4x4 matrices) — glue, plain JAX.
# ----------------------------------------------------------------------------
def compute_rotation_matrix_from_ortho6d(poses):
    x_raw = poses[:, 0:3]
    y_raw = poses[:, 3:6]
    x = x_raw / jnp.maximum(jnp.linalg.norm(x_raw, axis=-1, keepdims=True), 1e-8)
    z = jnp.cross(x, y_raw)
    z = z / jnp.maximum(jnp.linalg.norm(z, axis=-1, keepdims=True), 1e-8)
    y = jnp.cross(z, x)
    return jnp.stack([x, y, z], axis=-1)            # (B, 3, 3), columns x,y,z


def pose_update_with_reference_point(TCO, K_crop, vxvyvz, dRCO, tCR):
    zsrc = tCR[:, 2:3]
    vz = vxvyvz[:, 2:3]
    ztgt = vz * zsrc
    vxvy = vxvyvz[:, :2]
    fxfy = jnp.stack([K_crop[:, 0, 0], K_crop[:, 1, 1]], axis=-1)
    xsrcysrc = tCR[:, :2]
    tCR_out_xy = (vxvy / fxfy + xsrcysrc / zsrc) * ztgt
    tCR_out = jnp.concatenate([tCR_out_xy, ztgt], axis=-1)
    tCO_out = jnp.einsum("bij,bj->bi", dRCO, TCO[:, :3, 3] - tCR) + tCR_out
    R_out = jnp.einsum("bij,bjk->bik", dRCO, TCO[:, :3, :3])
    TCO_out = TCO.at[:, :3, :3].set(R_out).at[:, :3, 3].set(tCO_out)
    return TCO_out


def update_pose(TCO, K_crop, pose_outputs, tCR):
    assert pose_outputs.shape[-1] == 9
    dR = compute_rotation_matrix_from_ortho6d(pose_outputs[:, 0:6])
    vxvyvz = pose_outputs[:, 6:9]
    return pose_update_with_reference_point(TCO, K_crop, vxvyvz, dR, tCR)


# Pure-JAX reference for the Pallas kernel (correctness check).
def _net_forward_ref(images_crop, renders, w1, b1, wp, bp):
    x = jnp.concatenate([images_crop, renders], axis=1)     # (B, 9, H, W)
    B, C, H, W = x.shape
    xc = x.reshape(B, C, H * W)
    h = jnp.maximum(jnp.einsum("bcs,cf->bsf", xc, w1) + b1[None, None, :], 0.0)
    feat = jnp.mean(h, axis=1)
    return feat @ wp + bp


if __name__ == "__main__":
    key = jax.random.PRNGKey(0)
    B, H, W = 2, 16, 16                # small render_size for the synthetic test
    n_features = 32
    n_rendered_views = 1
    # input channels: 3 (cropped RGB) + n_views * (3 RGB + 3 normals) = 9
    C_in = 3 + n_rendered_views * 6

    k_img, k_rnd, k_w1, k_b1, k_wp, k_bp = jax.random.split(key, 6)

    # TODO(synk): crop_inputs / compute_crops_multiview / render_images_multiview
    # depend on an external Panda3D renderer + mesh database (no Pallas
    # equivalent); cropped images and renders are synthesized deterministically.
    images_crop = jax.random.uniform(k_img, (B, 3, H, W), dtype=jnp.float32)
    renders = jax.random.uniform(
        k_rnd, (B, n_rendered_views * 6, H, W), dtype=jnp.float32)

    # Deterministic synthetic parameters (backbone 1x1 conv + pose_fc head),
    # stored in (in, out) layout (PyTorch nn.Linear weights would be transposed).
    w1 = jax.random.normal(k_w1, (C_in, n_features), jnp.float32) * 0.1
    b1 = jax.random.normal(k_b1, (n_features,), jnp.float32) * 0.01
    wp = jax.random.normal(k_wp, (n_features, 9), jnp.float32) * 0.1
    bp = jax.random.normal(k_bp, (9,), jnp.float32) * 0.01

    # Input pose / cropped intrinsics (TCO_input already normalized: R = I).
    # TODO(synk): normalize_T / make_TCO_multiview are external lib3d helpers
    # not defined in the module source; identity rotation used here.
    TCO_input = jnp.tile(jnp.eye(4, dtype=jnp.float32)[None], (B, 1, 1))
    t = jnp.array([[0.05, -0.02, 1.0], [-0.03, 0.04, 1.2]], jnp.float32)
    TCO_input = TCO_input.at[:, :3, 3].set(t)
    K_crop = jnp.tile(
        jnp.array([[100.0, 0.0, W / 2.0],
                   [0.0, 100.0, H / 2.0],
                   [0.0, 0.0, 1.0]], jnp.float32)[None], (B, 1, 1))

    # tCR = TCO[:, :3, 3] + R @ tOR with tOR = 0 (as in forward()).
    tCR = TCO_input[:, :3, 3]

    # normalize_images is a no-op when input_depth=False and render_depth=False.
    # net_forward (Pallas kernel) -> pose head outputs (B, 9).
    # s_tile=128 exercises the multi-step S reduction (S = 256 here); at real
    # render sizes (e.g. 240x320) the wrapper auto-picks a larger lane-dense tile.
    pose_outputs = net_forward(images_crop, renders, w1, b1, wp, bp, s_tile=128)

    # update_pose -> TCO_output (B, 4, 4)
    TCO_output = update_pose(TCO_input, K_crop, pose_outputs, tCR)

    jax.block_until_ready((pose_outputs, TCO_output))

    ref = _net_forward_ref(images_crop, renders, w1, b1, wp, bp)
    assert jnp.allclose(pose_outputs, ref, atol=1e-4, rtol=1e-4), \
        "Pallas kernel mismatch"

    print("KERNEL_OK")
</pallas_src>

<mosaic_0001>
module attributes {stable_mosaic.version = 11 : i64} {
  func.func @_net_forward_kernel(%arg0: i32, %arg1: i32, %arg2: memref<1x3x128xf32, #tpu.memory_space<vmem>>, %arg3: memref<1x6x128xf32, #tpu.memory_space<vmem>>, %arg4: memref<32x3xf32, #tpu.memory_space<vmem>>, %arg5: memref<32x6xf32, #tpu.memory_space<vmem>>, %arg6: memref<32x1xf32, #tpu.memory_space<vmem>>, %arg7: memref<9x32xf32, #tpu.memory_space<vmem>>, %arg8: memref<9x1xf32, #tpu.memory_space<vmem>>, %arg9: memref<1x9x1xf32, #tpu.memory_space<vmem>>, %arg10: memref<32x1xf32, #tpu.memory_space<vmem>>) attributes {dimension_semantics = [#tpu.dimension_semantics<parallel>, #tpu.dimension_semantics<arbitrary>], iteration_bounds = array<i64: 2, 2>, scalar_prefetch = 0 : i64, scratch_operands = 1 : i64, tpu.core_type = #tpu.core_type<tc>, window_params = [{transform_indices = @transform_0, window_bounds = array<i64: 1, 3, 128>}, {transform_indices = @transform_1, window_bounds = array<i64: 1, 6, 128>}, {pipeline_mode = #tpu.pipeline_mode<synchronous>, transform_indices = @transform_2, window_bounds = array<i64: 32, 3>}, {pipeline_mode = #tpu.pipeline_mode<synchronous>, transform_indices = @transform_3, window_bounds = array<i64: 32, 6>}, {pipeline_mode = #tpu.pipeline_mode<synchronous>, transform_indices = @transform_4, window_bounds = array<i64: 32, 1>}, {pipeline_mode = #tpu.pipeline_mode<synchronous>, transform_indices = @transform_5, window_bounds = array<i64: 9, 32>}, {pipeline_mode = #tpu.pipeline_mode<synchronous>, transform_indices = @transform_6, window_bounds = array<i64: 9, 1>}, {transform_indices = @transform_7, window_bounds = array<i64: 1, 9, 1>}]} {
    %c0_i32 = arith.constant 0 : i32
    %0 = arith.cmpi eq, %arg1, %c0_i32 : i32
    %1 = arith.extui %0 : i1 to i32
    %c0_i32_0 = arith.constant 0 : i32
    %2 = arith.cmpi ne, %1, %c0_i32_0 : i32
    scf.if %2 {
      %cst_20 = arith.constant 0.000000e+00 : f32
      %25 = vector.broadcast %cst_20 : f32 to vector<32x1xf32>
      %c0_21 = arith.constant 0 : index
      %c0_22 = arith.constant 0 : index
      %26 = vector.load %arg10[%c0_21, %c0_22] : memref<32x1xf32, #tpu.memory_space<vmem>>, vector<32x1xf32>
      tpu.vector_store %arg10[%c0_21, %c0_22], %25 {strides = array<i32>} : memref<32x1xf32, #tpu.memory_space<vmem>>, vector<32x1xf32>,
    } else {
    }
    %c0 = arith.constant 0 : index
    %c0_1 = arith.constant 0 : index
    %3 = vector.load %arg4[%c0, %c0_1] : memref<32x3xf32, #tpu.memory_space<vmem>>, vector<32x3xf32>
    %c0_2 = arith.constant 0 : index
    %c0_3 = arith.constant 0 : index
    %c0_4 = arith.constant 0 : index
    %4 = vector.load %arg2[%c0_2, %c0_3, %c0_4] : memref<1x3x128xf32, #tpu.memory_space<vmem>>, vector<1x3x128xf32>
    %5 = vector.shape_cast %4 : vector<1x3x128xf32> to vector<3x128xf32>
    %cst = arith.constant dense<0.000000e+00> : vector<32x128xf32>
    %6 = tpu.matmul %3, %5, %cst {dimension_numbers = #tpu.dot_dimension_numbers<[1], [0], [0], [1], [0, 0, 1, 1], [], []>} : vector<32x3xf32>, vector<3x128xf32>, vector<32x128xf32> -> vector<32x128xf32>
    %c0_5 = arith.constant 0 : index
    %c0_6 = arith.constant 0 : index
    %7 = vector.load %arg5[%c0_5, %c0_6] : memref<32x6xf32, #tpu.memory_space<vmem>>, vector<32x6xf32>
    %c0_7 = arith.constant 0 : index
    %c0_8 = arith.constant 0 : index
    %c0_9 = arith.constant 0 : index
    %8 = vector.load %arg3[%c0_7, %c0_8, %c0_9] : memref<1x6x128xf32, #tpu.memory_space<vmem>>, vector<1x6x128xf32>
    %9 = vector.shape_cast %8 : vector<1x6x128xf32> to vector<6x128xf32>
    %cst_10 = arith.constant dense<0.000000e+00> : vector<32x128xf32>
    %10 = tpu.matmul %7, %9, %cst_10 {dimension_numbers = #tpu.dot_dimension_numbers<[1], [0], [0], [1], [0, 0, 1, 1], [], []>} : vector<32x6xf32>, vector<6x128xf32>, vector<32x128xf32> -> vector<32x128xf32>
    %11 = arith.addf %6, %10 : vector<32x128xf32>
    %c0_11 = arith.constant 0 : index
    %c0_12 = arith.constant 0 : index
    %12 = vector.load %arg6[%c0_11, %c0_12] : memref<32x1xf32, #tpu.memory_space<vmem>>, vector<32x1xf32>
    %13 = vector.broadcast %12 : vector<32x1xf32> to vector<32x128xf32>
    %14 = arith.addf %11, %13 : vector<32x128xf32>
    %cst_13 = arith.constant 0.000000e+00 : f32
    %15 = vector.broadcast %cst_13 : f32 to vector<32x128xf32>
    %16 = arith.maximumf %14, %15 : vector<32x128xf32>
    %c0_14 = arith.constant 0 : index
    %c0_15 = arith.constant 0 : index
    %17 = vector.load %arg10[%c0_14, %c0_15] : memref<32x1xf32, #tpu.memory_space<vmem>>, vector<32x1xf32>
    %cst_16 = arith.constant dense<0.000000e+00> : vector<32xf32>
    %18 = vector.multi_reduction <add>, %16, %cst_16 [1] : vector<32x128xf32> to vector<32xf32>
    %19 = vector.shape_cast %18 : vector<32xf32> to vector<32x1xf32>
    %20 = arith.addf %17, %19 : vector<32x1xf32>
    %c0_17 = arith.constant 0 : index
    %c0_18 = arith.constant 0 : index
    %21 = vector.load %arg10[%c0_17, %c0_18] : memref<32x1xf32, #tpu.memory_space<vmem>>, vector<32x1xf32>
    tpu.vector_store %arg10[%c0_17, %c0_18], %20 {strides = array<i32>} : memref<32x1xf32, #tpu.memory_space<vmem>>, vector<32x1xf32>,
    %c1_i32 = arith.constant 1 : i32
    %22 = arith.cmpi eq, %arg1, %c1_i32 : i32
    %23 = arith.extui %22 : i1 to i32
    %c0_i32_19 = arith.constant 0 : i32
    %24 = arith.cmpi ne, %23, %c0_i32_19 : i32
    scf.if %24 {
      %c0_20 = arith.constant 0 : index
      %c0_21 = arith.constant 0 : index
      %25 = vector.load %arg10[%c0_20, %c0_21] : memref<32x1xf32, #tpu.memory_space<vmem>>, vector<32x1xf32>
      %cst_22 = arith.constant 3.906250e-03 : f32
      %26 = vector.broadcast %cst_22 : f32 to vector<32x1xf32>
      %27 = arith.mulf %25, %26 : vector<32x1xf32>
      %c0_23 = arith.constant 0 : index
      %c0_24 = arith.constant 0 : index
      %28 = vector.load %arg7[%c0_23, %c0_24] : memref<9x32xf32, #tpu.memory_space<vmem>>, vector<9x32xf32>
      %cst_25 = arith.constant dense<0.000000e+00> : vector<9x1xf32>
      %29 = tpu.matmul %28, %27, %cst_25 {dimension_numbers = #tpu.dot_dimension_numbers<[1], [0], [0], [1], [0, 0, 1, 1], [], []>} : vector<9x32xf32>, vector<32x1xf32>, vector<9x1xf32> -> vector<9x1xf32>
      %c0_26 = arith.constant 0 : index
      %c0_27 = arith.constant 0 : index
      %30 = vector.load %arg8[%c0_26, %c0_27] : memref<9x1xf32, #tpu.memory_space<vmem>>, vector<9x1xf32>
      %31 = arith.addf %29, %30 : vector<9x1xf32>
      %c0_28 = arith.constant 0 : index
      %c0_29 = arith.constant 0 : index
      %c0_30 = arith.constant 0 : index
      %32 = vector.load %arg9[%c0_28, %c0_29, %c0_30] : memref<1x9x1xf32, #tpu.memory_space<vmem>>, vector<1x9x1xf32>
      %33 = vector.shape_cast %32 : vector<1x9x1xf32> to vector<9x1xf32>
      %34 = vector.shape_cast %31 : vector<9x1xf32> to vector<1x9x1xf32>
      tpu.vector_store %arg9[%c0_28, %c0_29, %c0_30], %34 {strides = array<i32>} : memref<1x9x1xf32, #tpu.memory_space<vmem>>, vector<1x9x1xf32>,
    } else {
    }
    return
  }
  func.func @transform_0(%arg0: i32, %arg1: i32) -> (i32, i32, i32) {
    %c0_i32 = arith.constant 0 : i32
    %c0_i32_0 = arith.constant 0 : i32
    return %arg0, %c0_i32, %arg1 : i32, i32, i32
  }
  func.func @transform_1(%arg0: i32, %arg1: i32) -> (i32, i32, i32) {
    %c0_i32 = arith.constant 0 : i32
    %c0_i32_0 = arith.constant 0 : i32
    return %arg0, %c0_i32, %arg1 : i32, i32, i32
  }
  func.func @transform_2(%arg0: i32, %arg1: i32) -> (i32, i32) {
    %c0_i32 = arith.constant 0 : i32
    %c0_i32_0 = arith.constant 0 : i32
    %c0_i32_1 = arith.constant 0 : i32
    return %c0_i32, %c0_i32_0 : i32, i32
  }
  func.func @transform_3(%arg0: i32, %arg1: i32) -> (i32, i32) {
    %c0_i32 = arith.constant 0 : i32
    %c0_i32_0 = arith.constant 0 : i32
    %c0_i32_1 = arith.constant 0 : i32
    return %c0_i32, %c0_i32_0 : i32, i32
  }
  func.func @transform_4(%arg0: i32, %arg1: i32) -> (i32, i32) {
    %c0_i32 = arith.constant 0 : i32
    %c0_i32_0 = arith.constant 0 : i32
    %c0_i32_1 = arith.constant 0 : i32
    return %c0_i32, %c0_i32_0 : i32, i32
  }
  func.func @transform_5(%arg0: i32, %arg1: i32) -> (i32, i32) {
    %c0_i32 = arith.constant 0 : i32
    %c0_i32_0 = arith.constant 0 : i32
    %c0_i32_1 = arith.constant 0 : i32
    return %c0_i32, %c0_i32_0 : i32, i32
  }
  func.func @transform_6(%arg0: i32, %arg1: i32) -> (i32, i32) {
    %c0_i32 = arith.constant 0 : i32
    %c0_i32_0 = arith.constant 0 : i32
    %c0_i32_1 = arith.constant 0 : i32
    return %c0_i32, %c0_i32_0 : i32, i32
  }
  func.func @transform_7(%arg0: i32, %arg1: i32) -> (i32, i32, i32) {
    %c0_i32 = arith.constant 0 : i32
    %c0_i32_0 = arith.constant 0 : i32
    %c0_i32_1 = arith.constant 0 : i32
    return %arg0, %c0_i32, %c0_i32_0 : i32, i32, i32
  }
}

</mosaic_0001>

<bundles_post_ra>
// kernel: tpu_custom_call.1
= control target key start
LH: loop header
LB: loop body
LE: loop exit
PB: predicated region body
PF: predicated region fallthrough
CT: control target
= control target key end

     0   :  { %s1009_s24 = smov 0   ;;  %s1011_s25 = smov 0   ;;  %s1134_s0 = inlined_call_operand.vmem [shape: f32[2,3,256], index: 0, kind: input, shape index: {}]   ;;  %s1135_s1 = inlined_call_operand.vmem [shape: f32[2,6,256], index: 1, kind: input, shape index: {}]   ;;  %s1136_s2 = inlined_call_operand.vmem [shape: f32[32,3], index: 2, kind: input, shape index: {}]   ;;  %s1137_s3 = inlined_call_operand.vmem [shape: f32[32,6], index: 3, kind: input, shape index: {}]   ;;  %s1138_s4 = inlined_call_operand.vmem [shape: f32[32,1], index: 4, kind: input, shape index: {}]   ;;  %s1139_s5 = inlined_call_operand.vmem [shape: f32[9,32], index: 5, kind: input, shape index: {}]   ;;  %s1140_s6 = inlined_call_operand.vmem [shape: f32[9,1], index: 6, kind: input, shape index: {}]   ;;  %s1141_s7 = inlined_call_operand.vmem [shape: f32[2,9,1], index: 7, kind: output, shape index: {}]  }
   0x1   :  { %s1013_s26 = smov 0   ;;  %s1015_s27 = smov 0  }
   0x2   :  { %s1017_s28 = smov 0  }
   0x3 LB: > { %s26_s29 = sadd.s32 1, %s957_s26  ;;  %s29_s30 = sadd.s32 1, %s961_s27  ;;  %s965_s28 = sphi %s1017_s28, %s17_s28   ;;  %s961_s27 = sphi %s1015_s27, %s1145_s27   ;;  %s957_s26 = sphi %s1013_s26, %s1144_s26   ;;  %s953_s25 = sphi %s1011_s25, %s1143_s25   ;;  %s949_s24 = sphi %s1009_s24, %s1142_s24  }
   0x4   : > { %p27_p0 = scmp.ge.s32.totalorder %s26_s29, 2  ;;  %p804_p1 = scmp.ge.s32.totalorder %s965_s28, 1 }
   0x5   : > { %p269_p2 = scmp.lt.s32.totalorder %s965_s28, 5 }
   0x6   : > { %s1147_s29 = smov (%p27_p0, %s26_s29), 0  ;;  %s1149_s30 = smov (!%p27_p0, %s29_s30), %s961_s27 }
   0x7   : > { %p270_p3 = pnand %p804_p1, %p269_p2  ;;  %p31_p4 = scmp.ge.s32.totalorder %s1149_s30, 2 }
   0x8   : > { %p312_p5 = scmp.lt.s32.totalorder (!%p270_p3), %s953_s25, 1  ;;  %p314_p6 = scmp.lt.s32.totalorder (!%p270_p3), %s949_s24, 1 }
   0x9   : > { %s1151_s30 = smov (%p31_p4, %s1149_s30), 0  ;;  %273 = sbr.rel (%p270_p3) target bundleno = 631 (0x277), region = 48 }
   0xa   : > { %p811_p7 = scmp.ne.s32.totalorder (!%p270_p3), %s949_s24, 0 }
  0x10   : > { %s1153_s25 = smov (!%p312_p5, %s953_s25), 1  ;;  %336 = sbr.rel (%p811_p7) target bundleno = 23 (0x17), region = 52 }
  0x11   : > { %s315_s8 = scalar_select %p314_p6, %s949_s24, 1 }
  0x12   : > { %s805_s9 = sshll.u32 %s1153_s25, 1  ;;  %s827_s10 = sshll.u32 %s1153_s25, 4  ;;  %vm337_vm0 = vcmask (!%p811_p7), 7168   ;;  %v967_v0 = vmov (!%p811_p7), 0.0  }
  0x13   : > { %s317_s11 = sadd.s32 %s805_s9, %s315_s8  ;;  %s1046_s14 = scalar_lea.vmem %s1141_s7, %s827_s10  ;;  %338 = vst.msk [vmem:[#allocation2] sm:$0xff] (!%p811_p7), %vm337_vm0, %v967_v0  ;;  %339 = vst.msk [vmem:[#allocation2 + $0x8] sm:$0xff] (!%p811_p7), %vm337_vm0, %v967_v0 }
  0x14   : > { %s806_s15 = sshll.u32 %s317_s11, 2  ;;  %s808_s16 = sshll.u32 %s317_s11, 3  ;;  %340 = vst.msk [vmem:[#allocation2 + $0x10] sm:$0xff] (!%p811_p7), %vm337_vm0, %v967_v0  ;;  %341 = vst.msk [vmem:[#allocation2 + $0x18] sm:$0xff] (!%p811_p7), %vm337_vm0, %v967_v0 }
  0x15   : > { %s319_s19 = scalar_lea.vmem %s1134_s0, %s806_s15  ;;  %s327_s22 = scalar_lea.vmem %s1135_s1, %s808_s16 }
  0x17 PF: > { %v351_v1 = vld [vmem:[%s327_s22] sm:$0x3f]  ;;  %vm365_vm1 = vcmask 1045504   ;;  %vm467_vm2 = vcmask 1042432   ;;  %vm352_vm3 = vcmask 48128   ;;  %vm454_vm4 = vcmask 23552  }
  0x18   : > { %v346_v2 = vld [vmem:[%s319_s19] sm:$0x7]  ;;  %844 = vmatprep.subr.msk.mxu1 %vm365_vm1, %v351_v1  ;;  %v348_v5 = vld [vmem:[%s1137_s3 + $0x8] sm:$0xff]  ;;  %v349_v7 = vld [vmem:[%s1137_s3 + $0x10] sm:$0xff]  ;;  %v968_v13 = vmov 0   ;;  %vm604_vm5 = vcmask 7168  }
  0x19   : > { %852 = vmatprep.subr.msk.mxu0 %vm467_vm2, %v346_v2  ;;  %v347_v3 = vld [vmem:[%s1137_s3] sm:$0xff]  ;;  %845 = vmatpush3.msk.msra.mxu1 %vm365_vm1, %v351_v1  ;;  %v343_v6 = vld [vmem:[%s1136_s2 + $0x8] sm:$0xff]  ;;  %v344_v8 = vld [vmem:[%s1136_s2 + $0x10] sm:$0xff]  ;;  %p822_p8 = scmp.ne.s32.totalorder %s949_s24, 1 }
  0x1a   : > { %v342_v4 = vld [vmem:[%s1136_s2] sm:$0xff]  ;;  %846 = vmatprep.mubr.msk.f32.mxu1 %vm352_vm3, %v347_v3  ;;  %853 = vmatpush3.msk.msra.mxu0 %vm467_vm2, %v346_v2  ;;  %v558_v10 = vld [vmem:[%s1138_s4 + $0x10] sm:$0xff]  ;;  %v350_v11 = vld [vmem:[%s1137_s3 + $0x18] sm:$0xff]  ;;  %vm625_vm6 = vcmask (!%p822_p8), 261120   ;;  %vm708_vm7 = vcmask (!%p822_p8), 0  }
  0x1b   : > { %854 = vmatprep.mubr.msk.f32.mxu0 %vm454_vm4, %v342_v4  ;;  %847 = vmatmul.mubr.msk.f32.vlgmr.msra.gmra.mrb[0].mxu1 %vm352_vm3, %v348_v5  ;;  %v556_v9 = vld [vmem:[%s1138_s4] sm:$0xff]  ;;  %v345_v12 = vld [vmem:[%s1136_s2 + $0x18] sm:$0xff]  ;;  %v557_v14 = vld [vmem:[%s1138_s4 + $0x8] sm:$0xff] }
  0x1c   : > { %855 = vmatmul.mubr.msk.f32.vlgmr.msra.gmra.mrb[0].mxu0 %vm454_vm4, %v343_v6  ;;  %849 = vmatprep.mubr.msk.f32.mxu1 %vm352_vm3, %v349_v7  ;;  %v559_v15 = vld [vmem:[%s1138_s4 + $0x18] sm:$0xff]  ;;  %v589_v40 = vld [vmem:[#allocation2 + $0x8] sm:$0xff]  ;;  %v588_v41 = vld [vmem:[#allocation2] sm:$0xff] }
  0x1d   : > { %857 = vmatprep.mubr.msk.f32.mxu0 %vm454_vm4, %v344_v8  ;;  %925 = vset.pattern.permute.xlu0 %v968_v13  ;;  %v590_v46 = vld [vmem:[#allocation2 + $0x10] sm:$0xff]  ;;  %v591_v49 = vld [vmem:[#allocation2 + $0x18] sm:$0xff]  ;;  %v621_v59 = vld [vmem:[%s1139_s5] sm:$0xff] (!%p822_p8) }
  0x1e   : > { %926 = vset.pattern.permute.xlu1 %v968_v13  ;;  %562 = vperm.xlu0 %925, %v556_v9   ;;  %v622_v63 = vld [vmem:[%s1139_s5 + $0x8] sm:$0x1] (!%p822_p8)  ;;  %v623_v1 = vld [vmem:[%s1140_s6] sm:$0xff] (!%p822_p8) }
  0x1f   : > { %572 = vperm.xlu1 %926, %v558_v10   ;;  %850 = vmatmul.mubr.msk.f32.gmra.mrb[2].mxu1 %vm352_vm3, %v350_v11  ;;  %v624_v0 = vld [vmem:[%s1140_s6 + $0x8] sm:$0x1] (!%p822_p8) }
  0x20   : > { %858 = vmatmul.mubr.msk.f32.gmra.mrb[2].mxu0 %vm454_vm4, %v345_v12 }
  0x21   : > { %868 = vmatprep.mubr.msk.f32.mxu0 (!%p822_p8), %vm625_vm6, %v621_v59 }
  0x22   : > { %567 = vperm.xlu0 %925, %v557_v14  }
  0x23   : > { %577 = vperm.xlu1 %926, %v559_v15  }
  0x9d   : > { %v563_v16 = vpop.permute.xlu0 %562 }
  0x9e   : > { %v573_v17 = vpop.permute.xlu1 %572 }
  0xa1   : > { %v568_v18 = vpop.permute.xlu0 %567 }
  0xa2   : > { %v578_v35 = vpop.permute.xlu1 %577 }
  0xee   : > { %v848_v19 = vpop.f32.mrb[0].mxu1 }
  0xef   : > { %v856_v20 = vpop.f32.mrb[0].mxu0  ;;  %v435_v22 = vpop.f32.mrb[1].mxu1 }
  0xf0   : > { %v543_v21 = vadd.f32 %v856_v20, %v848_v19  ;;  %v537_v23 = vpop.f32.mrb[1].mxu0 }
  0xf1   : > { %v538_v24 = vadd.f32 %v537_v23, %v435_v22 }
  0xf2   : > { %v581_v25 = vadd.f32 %v568_v18, %v543_v21  ;;  %v851_v26 = vpop.f32.mrb[2].mxu1 }
  0xf3   : > { %v859_v27 = vpop.f32.mrb[2].mxu0  ;;  %v580_v28 = vadd.f32 %v563_v16, %v538_v24  ;;  %v445_v31 = vpop.f32.mrb[3].mxu1 }
  0xf4   : > { %v585_v29 = vmax.f32 %v581_v25, 0.0  ;;  %v553_v30 = vadd.f32 %v859_v27, %v851_v26  ;;  %v547_v32 = vpop.f32.mrb[3].mxu0 }
  0xf5   : > { %v548_v33 = vadd.f32 %v547_v32, %v445_v31  ;;  %v584_v34 = vmax.f32 %v580_v28, 0.0 }
  0xf6   : > { %594 = vadd.xlane.f32.xlu1 %v585_v29  ;;  %v583_v37 = vadd.f32 %v578_v35, %v553_v30 }
  0xf7   : > { %592 = vadd.xlane.f32.xlu0 %v584_v34  ;;  %v582_v36 = vadd.f32 %v573_v17, %v548_v33 }
  0xf8   : > { %v587_v39 = vmax.f32 %v583_v37, 0.0 }
  0xf9   : > { %v586_v38 = vmax.f32 %v582_v36, 0.0 }
  0xfb   : > { %596 = vadd.xlane.f32.xlu0 %v586_v38 }
  0xff   : > { %598 = vadd.xlane.f32.xlu0 %v587_v39 }
 0x183   : > { %v595_v42 = vpop.xlane.xlu1 %594 }
 0x184   : > { %v601_v43 = vadd.f32 %v595_v42, %v589_v40  ;;  %v593_v44 = vpop.xlane.xlu0 %592 }
 0x185   : > { %v600_v45 = vadd.f32 %v593_v44, %v588_v41 }
 0x186   : > { %606 = vst.msk [vmem:[#allocation2 + $0x8] sm:$0xff] %vm604_vm5, %v601_v43 }
 0x187   : > { %605 = vst.msk [vmem:[#allocation2] sm:$0xff] %vm604_vm5, %v600_v45 }
 0x188   : > { %v597_v47 = vpop.xlane.xlu0 %596 }
 0x189   : > { %v602_v48 = vadd.f32 %v597_v47, %v590_v46  ;;  %612 = sbr.rel (%p822_p8) target bundleno = 631 (0x277), region = 56 }
 0x18b   : > { %607 = vst.msk [vmem:[#allocation2 + $0x10] sm:$0xff] %vm604_vm5, %v602_v48 }
 0x18c   : > { %v599_v50 = vpop.xlane.xlu0 %598 }
 0x18d   : > { %v603_v51 = vadd.f32 %v599_v50, %v591_v49  ;;  %v614_v53 = vld [vmem:[#allocation2 + $0x8] sm:$0xff] (!%p822_p8) }
 0x18e   : > { %v613_v52 = vld [vmem:[#allocation2] sm:$0xff] (!%p822_p8)  ;;  %v618_v56 = vmul.f32 (!%p822_p8), 0.00390625, %v614_v53 }
 0x18f   : > { %608 = vst.msk [vmem:[#allocation2 + $0x18] sm:$0xff] %vm604_vm5, %v603_v51  ;;  %v617_v55 = vmul.f32 (!%p822_p8), 0.00390625, %v613_v52 }
 0x191   : > { %v871_v61 = vpack.c.bf16 %v618_v56, %v617_v55 }
 0x192   : > { %v615_v54 = vld [vmem:[#allocation2 + $0x10] sm:$0xff] }
 0x193   : > { %v619_v58 = vmul.f32 0.00390625, %v615_v54  ;;  %872 = vmatprep.subr.bf16.mxu0 %v871_v61 }
 0x194   : > { %874 = vmatpush3.bf16.msra.mxu0 %v871_v61 }
 0x196   : > { %v616_v57 = vld [vmem:[#allocation2 + $0x18] sm:$0xff] }
 0x197   : > { %v620_v60 = vmul.f32 0.00390625, %v616_v57 }
 0x199   : > { %v875_v62 = vpack.c.bf16 %v620_v60, %v619_v58 }
 0x19b   : > { %876 = vmatprep.subr.bf16.mxu0 %v875_v62 }
 0x19c   : > { %878 = vmatpush3.bf16.msra.mxu0 %v875_v62 }
 0x19f   : > { %869 = vmatmul.mubr.msk.f32.vlgmr.msra.gmra.mrb[0].mxu0 %vm625_vm6, %v622_v63 }
 0x272   : > { %v870_v2 = vpop.f32.mrb[0].mxu0 }
 0x273   : > { %v704_v3 = vadd.f32 %v870_v2, %v624_v0  ;;  %v698_v4 = vpop.f32.mrb[1].mxu0 }
 0x274   : > { %v699_v5 = vadd.f32 %v698_v4, %v623_v1 }
 0x275   : > { %709 = vst.msk [vmem:[%s1046_s14 + $0x8] sm:$0x1] %vm708_vm7, %v704_v3 }
 0x276   : > { %707 = vst.msk [vmem:[%s1046_s14] sm:$0xff] %vm604_vm5, %v699_v5 }
 0x277 PF: > { %s17_s28 = sadd.s32 1, %s965_s28   ;;  %s1142_s24 = smov %s957_s26 }
 0x278   : > { %p14_p9 = scmp.ge.s32.totalorder %s17_s28, 6   ;;  %s1143_s25 = smov %s961_s27 }
 0x279   : > { %s1144_s26 = smov %s1147_s29  ;;  %s1145_s27 = smov %s1151_s30 }
 0x27a   :  { %16 = sbr.rel (!%p14_p9) target bundleno = 3 (0x3), region = 89 }

</bundles_post_ra>
